<compile_context>
chip_gen: v5e
topology: v5e:2x2
jax: 0.10.0
libtpu: 0.0.40
codegen_flags: <defaults>
</compile_context>

<pallas_src>
import math

import jax
import jax.numpy as jnp
from jax.experimental import pallas as pl
from jax.experimental.pallas import tpu as pltpu


def _drop_path_kernel(scale_ref, x_ref, o_ref):
    # scale_ref: (Bt, 1, 1) per-sample multiplier (mask / keep_prob), x.dtype
    # x_ref / o_ref: (Bt, Mt, LANE) lane-dense tile
    o_ref[...] = x_ref[...] * scale_ref[...]


_LANE_CANDIDATES = (1024, 512, 256, 128)


def _best_divisor(n, cap, mult=1):
    """Largest divisor d of n with d <= cap and d % mult == 0 (None if none)."""
    best = None
    d = 1
    hi = min(n, cap)
    while d <= hi:
        if n % d == 0 and d % mult == 0:
            best = d
        d += 1
    return best


def _plan_tiles(batch, n_per_sample, itemsize, target_bytes=1 << 20):
    """Pick (lane, rows_per_sample, row_tile, batch_tile) for ~1 MiB blocks."""
    # Lane width: largest candidate dividing the sample exactly (no padding);
    # otherwise 512 with zero-padding of the flattened sample.
    lane = next((l for l in _LANE_CANDIDATES if n_per_sample % l == 0), 512)
    rows = -(-n_per_sample // lane)
    max_rows = max(1, target_bytes // (lane * itemsize))

    # Sublane tile: prefer a multiple-of-8 divisor of `rows` (aligned vregs,
    # unmasked stores); else the full extent if small; else pad rows to /8.
    row_tile = _best_divisor(rows, max_rows, mult=8)
    if row_tile is None:
        if rows * lane * itemsize <= 4 * target_bytes:
            row_tile = rows  # full-extent sublane dim is always legal
        else:
            rows = -(-rows // 8) * 8
            row_tile = _best_divisor(rows, max_rows, mult=8)

    # Batch tile: only batch samples together when one block already covers a
    # whole (padded) sample; amortizes per-step overhead for small maps.
    batch_tile = 1
    if row_tile == rows:
        per_sample_bytes = rows * lane * itemsize
        batch_tile = _best_divisor(batch, max(1, target_bytes // per_sample_bytes))
    return lane, rows, row_tile, batch_tile


def drop_path(x, drop_prob: float = 0.0, training: bool = False, *, key=None):
    """JAX/Pallas equivalent of drop_path_f. Works for any x with rank >= 2."""
    if drop_prob == 0.0 or not training:
        return x
    assert key is not None, "need a PRNG key when training with drop_prob > 0"

    keep_prob = 1.0 - drop_prob
    batch = x.shape[0]
    n = math.prod(x.shape[1:])

    # Per-sample binary mask, exactly as torch: floor(keep_prob + U[0,1)).
    u = jax.random.uniform(key, (batch,), dtype=jnp.float32)
    mask = jnp.floor(keep_prob + u)                          # {0., 1.}
    scale = (mask / keep_prob).astype(x.dtype).reshape(batch, 1, 1)

    itemsize = jnp.dtype(x.dtype).itemsize
    lane, rows, row_tile, batch_tile = _plan_tiles(batch, n, itemsize)

    xf = x.reshape(batch, n)
    n_padded = rows * lane
    if n_padded != n:
        xf = jnp.pad(xf, ((0, 0), (0, n_padded - n)))
    x3 = xf.reshape(batch, rows, lane)

    grid = (batch // batch_tile, rows // row_tile)
    bytes_io = 2 * batch * n_padded * itemsize + batch * itemsize

    out3 = pl.pallas_call(
        _drop_path_kernel,
        out_shape=jax.ShapeDtypeStruct((batch, rows, lane), x.dtype),
        grid=grid,
        in_specs=[
            pl.BlockSpec((batch_tile, 1, 1), lambda i, j: (i, 0, 0)),
            pl.BlockSpec((batch_tile, row_tile, lane), lambda i, j: (i, j, 0)),
        ],
        out_specs=pl.BlockSpec((batch_tile, row_tile, lane),
                               lambda i, j: (i, j, 0)),
        compiler_params=pltpu.CompilerParams(
            # TODO(synk): on v7x, CORE_PARALLEL on the leading axis engages both TCs.
            dimension_semantics=("parallel", "parallel")),
        cost_estimate=pl.CostEstimate(
            flops=batch * n_padded, transcendentals=0, bytes_accessed=bytes_io),
    )(scale, x3)

    if n_padded != n:
        return out3.reshape(batch, n_padded)[:, :n].reshape(x.shape)
    return out3.reshape(x.shape)


class DropPath:
    """Mirror of the PyTorch module (no parameters)."""

    def __init__(self, drop_prob=None):
        self.drop_prob = drop_prob
        self.training = True

    def __call__(self, x, key=None):
        return drop_path(x, self.drop_prob or 0.0, self.training, key=key)


if __name__ == "__main__":
    root = jax.random.PRNGKey(0)
    kx, kmask, kx2, kmask2 = jax.random.split(root, 4)

    drop_prob = 0.2
    keep_prob = 1.0 - drop_prob
    module = DropPath(drop_prob)
    module.training = True

    # Case 1: lane-aligned spatial map (B, C, H, W) = (2, 4, 16, 16).
    x = jax.random.normal(kx, (2, 4, 16, 16), dtype=jnp.float32)
    out = jax.block_until_ready(module(x, key=kmask))
    u = jax.random.uniform(kmask, (x.shape[0],), dtype=jnp.float32)
    mask = jnp.floor(keep_prob + u).reshape(-1, 1, 1, 1)
    ref = x / keep_prob * mask
    assert jnp.allclose(out, ref, atol=1e-6, rtol=1e-6), "mismatch (aligned case)"

    # Case 2: non-128-multiple spatial map (7x7) exercises the padded path.
    x2 = jax.random.normal(kx2, (3, 4, 7, 7), dtype=jnp.float32)
    out2 = jax.block_until_ready(module(x2, key=kmask2))
    u2 = jax.random.uniform(kmask2, (x2.shape[0],), dtype=jnp.float32)
    mask2 = jnp.floor(keep_prob + u2).reshape(-1, 1, 1, 1)
    ref2 = x2 / keep_prob * mask2
    assert jnp.allclose(out2, ref2, atol=1e-6, rtol=1e-6), "mismatch (padded case)"

    # Eval / drop_prob=0 path is identity.
    module.training = False
    out_eval = jax.block_until_ready(module(x))
    assert jnp.array_equal(out_eval, x)

    print("KERNEL_OK")
</pallas_src>

<mosaic_0001>
module attributes {stable_mosaic.version = 11 : i64} {
  func.func @_drop_path_kernel(%arg0: i32, %arg1: i32, %arg2: memref<2x1x1xf32, #tpu.memory_space<vmem>>, %arg3: memref<2x1x1024xf32, #tpu.memory_space<vmem>>, %arg4: memref<2x1x1024xf32, #tpu.memory_space<vmem>>) attributes {dimension_semantics = [#tpu.dimension_semantics<parallel>, #tpu.dimension_semantics<parallel>], iteration_bounds = array<i64: 1, 1>, scalar_prefetch = 0 : i64, scratch_operands = 0 : i64, tpu.core_type = #tpu.core_type<tc>, window_params = [{transform_indices = @transform_0, window_bounds = array<i64: 2, 1, 1>}, {transform_indices = @transform_1, window_bounds = array<i64: 2, 1, 1024>}, {transform_indices = @transform_2, window_bounds = array<i64: 2, 1, 1024>}]} {
    %c0 = arith.constant 0 : index
    %c0_0 = arith.constant 0 : index
    %c0_1 = arith.constant 0 : index
    %0 = vector.load %arg3[%c0, %c0_0, %c0_1] : memref<2x1x1024xf32, #tpu.memory_space<vmem>>, vector<2x1x1024xf32>
    %c0_2 = arith.constant 0 : index
    %c0_3 = arith.constant 0 : index
    %c0_4 = arith.constant 0 : index
    %1 = vector.load %arg2[%c0_2, %c0_3, %c0_4] : memref<2x1x1xf32, #tpu.memory_space<vmem>>, vector<2x1x1xf32>
    %2 = vector.broadcast %1 : vector<2x1x1xf32> to vector<2x1x1024xf32>
    %3 = arith.mulf %0, %2 : vector<2x1x1024xf32>
    %c0_5 = arith.constant 0 : index
    %c0_6 = arith.constant 0 : index
    %c0_7 = arith.constant 0 : index
    %4 = vector.load %arg4[%c0_5, %c0_6, %c0_7] : memref<2x1x1024xf32, #tpu.memory_space<vmem>>, vector<2x1x1024xf32>
    tpu.vector_store %arg4[%c0_5, %c0_6, %c0_7], %3 {strides = array<i32>} : memref<2x1x1024xf32, #tpu.memory_space<vmem>>, vector<2x1x1024xf32>,
    return
  }
  func.func @transform_0(%arg0: i32, %arg1: i32) -> (i32, i32, i32) {
    %c0_i32 = arith.constant 0 : i32
    %c0_i32_0 = arith.constant 0 : i32
    %c0_i32_1 = arith.constant 0 : i32
    return %arg0, %c0_i32, %c0_i32_0 : i32, i32, i32
  }
  func.func @transform_1(%arg0: i32, %arg1: i32) -> (i32, i32, i32) {
    %c0_i32 = arith.constant 0 : i32
    %c0_i32_0 = arith.constant 0 : i32
    return %arg0, %arg1, %c0_i32 : i32, i32, i32
  }
  func.func @transform_2(%arg0: i32, %arg1: i32) -> (i32, i32, i32) {
    %c0_i32 = arith.constant 0 : i32
    %c0_i32_0 = arith.constant 0 : i32
    return %arg0, %arg1, %c0_i32 : i32, i32, i32
  }
}

</mosaic_0001>

<bundles_post_ra>
// kernel: tpu_custom_call.1
= control target key start
LH: loop header
LB: loop body
LE: loop exit
PB: predicated region body
PF: predicated region fallthrough
CT: control target
= control target key end

     0   :  { %7 = vsyncpa [#allocation3], 0  ;;  %s157_s0 = inlined_call_operand.vmem [shape: f32[2,1,1], index: 0, kind: input, shape index: {}]   ;;  %s158_s1 = inlined_call_operand.hbm [shape: f32[2,1,1024], index: 1, kind: input, shape index: {}]   ;;  %s159_s2 = inlined_call_operand.hbm [shape: f32[2,1,1024], index: 2, kind: output, shape index: {}]  }
   0x1   :  { %8 = vsyncpa [#allocation4], 0  ;;  %s15_s11 = sshll.u32 %s158_s1, 4  ;;  %s125_s12 = smov [#allocation2]   ;;  %s16_s11 = int_to_ptr.hbm [resolvable:$true] %s15_s11 }
   0x2   :  { %s17_s13 = sshll.u32 %s125_s12, 4  ;;  %s126_s14 = smov 128   ;;  %s18_s13 = int_to_ptr.vmem [resolvable:$true] %s17_s13 }
   0x3   :  { %s127_s15 = smov 8  }
   0x4   :  { %23 = dma.hbm_to_vmem [thread:$0]  %s16_s11, 256, %s18_s13, [#allocation3], %s126_s14, %s126_s14, %s127_s15  }
   0x5   :  { %121 = dma.done.wait [#allocation3], 256  }
   0x6   :  { %122 = vsyncadd [#allocation3], 4294967040  ;;  %v128_v0 = vmov 0   ;;  %v30_v1 = vld [vmem:[%s157_s0] sm:$0x1]  ;;  %v29_v8 = vld [vmem:[#allocation2 + $0x8] sm:$0xff] }
   0x7   :  { %72 = vset.pattern.permute.xlu0 %v128_v0  ;;  %v31_v2 = vld [vmem:[%s157_s0 + $0x1] sm:$0x1]  ;;  %s129_s1 = smov [#allocation5]   ;;  %s54_s23 = sshll.u32 %s159_s2, 4  ;;  %s55_s23 = int_to_ptr.hbm [resolvable:$true] %s54_s23 }
   0x8   :  { %34 = vperm.xlu0 %72, %v30_v1   ;;  %v28_v4 = vld [vmem:[#allocation2] sm:$0xff]  ;;  %s52_s20 = sshll.u32 %s129_s1, 4  ;;  %s53_s20 = int_to_ptr.vmem [resolvable:$true] %s52_s20 }
  0x10   :  { %40 = vperm.xlu0 %72, %v31_v2  }
  0x7a   :  { %v35_v3 = vpop.permute.xlu0 %34 }
  0x7b   :  { %v37_v5 = vperm.slane %v35_v3, 0 }
  0x7d   :  { %v44_v6 = vmul.f32 %v37_v5, %v28_v4 }
  0x7f   :  { %46 = vst [vmem:[#allocation5] sm:$0xff] %v44_v6 }
  0x82   :  { %v41_v7 = vpop.permute.xlu0 %40 }
  0x83   :  { %v43_v9 = vperm.slane %v41_v7, 0 }
  0x85   :  { %v45_v10 = vmul.f32 %v43_v9, %v29_v8 }
  0x87   :  { %47 = vst [vmem:[#allocation5 + $0x8] sm:$0xff] %v45_v10 }
  0x88   :  { %60 = dma.vmem_to_hbm [thread:$0]  %s53_s20, 256, %s55_s23, [#allocation4], %s126_s14, %s126_s14, %s127_s15  }
  0x89   :  { %123 = dma.done.wait [#allocation4], 256  }
  0x8a   :  { %124 = vsyncadd [#allocation4], 4294967040 }
  0x8b   :  { %65 = vsyncpa [#allocation3], 1 }
  0x8c   :  { %66 = vsyncpa [#allocation4], 1 }

</bundles_post_ra>
